<compile_context>
chip_gen: v5e
topology: v5e:2x2
jax: 0.10.0
libtpu: 0.0.40
codegen_flags: <defaults>
</compile_context>

<pallas_src>
import jax
import jax.numpy as jnp
from jax.experimental import pallas as pl
from jax.experimental.pallas import tpu as pltpu


def _drop_path_kernel(x_ref, scale_ref, o_ref):
    # x_ref / o_ref: (TB, TF) tile.  scale_ref: (TB, 1) per-sample scale in
    # x's dtype (0.0 for dropped samples, 1/keep_prob for kept samples).
    o_ref[...] = x_ref[...] * scale_ref[...]


def _target_block_bytes():
    """Per-generation block-size target (bigger blocks on v6e / v7x)."""
    try:
        kind = jax.devices()[0].device_kind.lower()
    except Exception:
        kind = ""
    if ("v6" in kind) or ("v7" in kind) or ("7x" in kind):
        # 32 MiB default scoped VMEM: 4 MiB blocks -> ~16 MiB double-buffered
        # in+out working set, comfortably under the limit.
        return 4 << 20
    # v5e (16 MiB default scoped VMEM) and unknown chips: stay at 2 MiB.
    return 2 << 20


def _choose_tiles(B, F, itemsize, target_bytes):
    """Pick a lane-dense (TB, TF) block, grown toward target_bytes."""
    sublane = 8 * max(1, 4 // itemsize)          # 8 f32 / 16 bf16 / 32 int8
    tb = B if B < sublane else sublane

    if F % 128 == 0:
        max_tf = max(128, (target_bytes // (itemsize * tb)) // 128 * 128)
        tf = min(F, max_tf)
    else:
        # Ragged feature dim.  Either take it whole (exact full-dim block) if
        # it is small, or tile in 128-lane chunks and let Pallas mask the
        # ragged edge block — so one giant (tb, F) slab can never blow the
        # scoped VMEM limit (hit first on v7x).
        if tb * F * itemsize <= 2 * target_bytes:
            tf = F
        else:
            tf = max(128, (target_bytes // (itemsize * tb)) // 128 * 128)

    # Grow TB (in sublane multiples, or to the full batch dim) toward the
    # target block size: amortizes the ~0.35 us/step pipeline overhead for
    # small / medium F.
    if B * tf * itemsize <= target_bytes:
        tb = B
    elif tb < B:
        grown = (target_bytes // (itemsize * tf)) // sublane * sublane
        tb = max(tb, min(B, grown))

    # v7x has 2 TensorCores sharded over the "parallel" grid axes: make sure a
    # non-tiny tensor produces at least 2 grid blocks (near-zero cost on
    # v5e/v6e, which have a single TC).
    if (pl.cdiv(B, tb) * pl.cdiv(F, tf) < 2
            and B * F * itemsize >= (512 << 10)):
        if tf % 256 == 0:
            tf //= 2                              # keeps tf a multiple of 128
        elif tb >= 2 * sublane:
            tb = (tb // 2) // sublane * sublane   # keeps tb a sublane multiple
    return tb, tf


def drop_path(x, *, drop_prob, key, training=True):
    """DropPath forward. x: [B, ...] (rank >= 2), per-sample drop.

    drop_prob must be a static Python float — it gates the identity early
    return at trace time (same as the PyTorch module's attribute).
    """
    if not isinstance(drop_prob, (int, float)):
        raise TypeError(f"drop_prob must be a static Python float, got {type(drop_prob)}")
    if drop_prob == 0.0 or not training:
        return x
    keep_prob = 1.0 - float(drop_prob)
    B = x.shape[0]

    # Per-sample keep mask: floor(keep_prob + U[0,1)) (identical formula to the
    # PyTorch module, i.e. 1{U >= drop_prob}), folded with the 1/keep_prob
    # factor into a single per-sample scale, pre-cast to x.dtype so the kernel
    # body is a single VPU multiply.
    u = jax.random.uniform(key, (B,), dtype=jnp.float32)
    mask = jnp.floor(jnp.float32(keep_prob) + u)                     # {0.0, 1.0}
    scale = (mask / jnp.float32(keep_prob)).astype(x.dtype).reshape(B, 1)

    # Lane-dense view: flatten all non-batch dims (contiguous, no data movement).
    orig_shape = x.shape
    F = 1
    for d in orig_shape[1:]:
        F *= d
    x2 = x.reshape(B, F)

    itemsize = jnp.dtype(x.dtype).itemsize
    tb, tf = _choose_tiles(B, F, itemsize, _target_block_bytes())
    grid = (pl.cdiv(B, tb), pl.cdiv(F, tf))

    out2 = pl.pallas_call(
        _drop_path_kernel,
        out_shape=jax.ShapeDtypeStruct((B, F), x.dtype),
        grid_spec=pltpu.PrefetchScalarGridSpec(
            num_scalar_prefetch=0,
            grid=grid,
            in_specs=[
                pl.BlockSpec((tb, tf), lambda i, j: (i, j)),   # x tile
                pl.BlockSpec((tb, 1), lambda i, j: (i, 0)),    # per-sample scale
            ],
            out_specs=pl.BlockSpec((tb, tf), lambda i, j: (i, j)),
        ),
        compiler_params=pltpu.CompilerParams(
            dimension_semantics=("parallel", "parallel"),
            vmem_limit_bytes=32 << 20),
    )(x2, scale)
    return out2.reshape(orig_shape)


def _ref_drop_path(x, drop_prob, key):
    """Pure-JAX reference (same mask draw and formulation as the kernel)."""
    keep_prob = 1.0 - drop_prob
    B = x.shape[0]
    u = jax.random.uniform(key, (B,), dtype=jnp.float32)
    mask = jnp.floor(jnp.float32(keep_prob) + u)
    scale = (mask / jnp.float32(keep_prob)).astype(x.dtype)
    return x * scale.reshape((B,) + (1,) * (x.ndim - 1))


if __name__ == "__main__":
    drop_prob = 0.5
    root = jax.random.PRNGKey(0)
    kx1, km1, kx2, km2, kx3, km3, kx4, km4 = jax.random.split(root, 8)

    # Case 1: Swin-T-like token tensor, f32: B=2, N=8 tokens, C=128 channels.
    x1 = jax.random.normal(kx1, (2, 8, 128), dtype=jnp.float32)
    o1 = jax.block_until_ready(drop_path(x1, drop_prob=drop_prob, key=km1, training=True))
    r1 = _ref_drop_path(x1, drop_prob, km1)
    assert o1.shape == x1.shape and o1.dtype == x1.dtype
    assert jnp.allclose(o1, r1, atol=1e-6, rtol=1e-6)

    # Case 2: bf16, B=40, C=96 (F=768, a 128-multiple after flattening) —
    # exercises the grown-TB path.
    x2 = jax.random.normal(kx2, (40, 8, 96), dtype=jnp.bfloat16)
    o2 = jax.block_until_ready(drop_path(x2, drop_prob=drop_prob, key=km2, training=True))
    r2 = _ref_drop_path(x2, drop_prob, km2)
    assert o2.shape == x2.shape and o2.dtype == x2.dtype
    assert jnp.allclose(o2.astype(jnp.float32), r2.astype(jnp.float32), atol=1e-2, rtol=1e-2)

    # Case 3: ragged feature dim (F=672, not a 128-multiple) — exercises the
    # VMEM-guarded full-slab fallback.
    x3 = jax.random.normal(kx3, (4, 7, 96), dtype=jnp.float32)
    o3 = jax.block_until_ready(drop_path(x3, drop_prob=drop_prob, key=km3, training=True))
    r3 = _ref_drop_path(x3, drop_prob, km3)
    assert o3.shape == x3.shape and o3.dtype == x3.dtype
    assert jnp.allclose(o3, r3, atol=1e-6, rtol=1e-6)

    # Case 4: ~1 MiB tensor — exercises the >=2-block split (both-core) path
    # and a multi-block grid.
    x4 = jax.random.normal(kx4, (64, 16, 256), dtype=jnp.float32)
    o4 = jax.block_until_ready(drop_path(x4, drop_prob=drop_prob, key=km4, training=True))
    r4 = _ref_drop_path(x4, drop_prob, km4)
    assert o4.shape == x4.shape and o4.dtype == x4.dtype
    assert jnp.allclose(o4, r4, atol=1e-6, rtol=1e-6)

    # Identity paths (drop_prob == 0 or eval mode).
    o_eval = jax.block_until_ready(drop_path(x1, drop_prob=drop_prob, key=km1, training=False))
    assert jnp.array_equal(o_eval, x1)
    o_p0 = jax.block_until_ready(drop_path(x1, drop_prob=0.0, key=km1, training=True))
    assert jnp.array_equal(o_p0, x1)

    print("KERNEL_OK")
</pallas_src>

<mosaic_0001>
module attributes {stable_mosaic.version = 11 : i64} {
  func.func @_drop_path_kernel(%arg0: i32, %arg1: i32, %arg2: memref<2x1024xf32, #tpu.memory_space<vmem>>, %arg3: memref<2x1xf32, #tpu.memory_space<vmem>>, %arg4: memref<2x1024xf32, #tpu.memory_space<vmem>>) attributes {dimension_semantics = [#tpu.dimension_semantics<parallel>, #tpu.dimension_semantics<parallel>], iteration_bounds = array<i64: 1, 1>, scalar_prefetch = 0 : i64, scratch_operands = 0 : i64, tpu.core_type = #tpu.core_type<tc>, window_params = [{transform_indices = @transform_0, window_bounds = array<i64: 2, 1024>}, {transform_indices = @transform_1, window_bounds = array<i64: 2, 1>}, {transform_indices = @transform_2, window_bounds = array<i64: 2, 1024>}]} {
    %c0 = arith.constant 0 : index
    %c0_0 = arith.constant 0 : index
    %0 = vector.load %arg2[%c0, %c0_0] : memref<2x1024xf32, #tpu.memory_space<vmem>>, vector<2x1024xf32>
    %c0_1 = arith.constant 0 : index
    %c0_2 = arith.constant 0 : index
    %1 = vector.load %arg3[%c0_1, %c0_2] : memref<2x1xf32, #tpu.memory_space<vmem>>, vector<2x1xf32>
    %2 = vector.broadcast %1 : vector<2x1xf32> to vector<2x1024xf32>
    %3 = arith.mulf %0, %2 : vector<2x1024xf32>
    %c0_3 = arith.constant 0 : index
    %c0_4 = arith.constant 0 : index
    %4 = vector.load %arg4[%c0_3, %c0_4] : memref<2x1024xf32, #tpu.memory_space<vmem>>, vector<2x1024xf32>
    tpu.vector_store %arg4[%c0_3, %c0_4], %3 {strides = array<i32>} : memref<2x1024xf32, #tpu.memory_space<vmem>>, vector<2x1024xf32>,
    return
  }
  func.func @transform_0(%arg0: i32, %arg1: i32) -> (i32, i32) {
    %c0_i32 = arith.constant 0 : i32
    return %arg0, %arg1 : i32, i32
  }
  func.func @transform_1(%arg0: i32, %arg1: i32) -> (i32, i32) {
    %c0_i32 = arith.constant 0 : i32
    %c0_i32_0 = arith.constant 0 : i32
    return %arg0, %c0_i32 : i32, i32
  }
  func.func @transform_2(%arg0: i32, %arg1: i32) -> (i32, i32) {
    %c0_i32 = arith.constant 0 : i32
    return %arg0, %arg1 : i32, i32
  }
}

</mosaic_0001>

<bundles_post_ra>
// kernel: tpu_custom_call.1
= control target key start
LH: loop header
LB: loop body
LE: loop exit
PB: predicated region body
PF: predicated region fallthrough
CT: control target
= control target key end

     0   :  { %7 = vsyncpa [#allocation3], 0  ;;  %s144_s0 = inlined_call_operand.hbm [shape: f32[2,1024], index: 0, kind: input, shape index: {}]   ;;  %s145_s1 = inlined_call_operand.vmem [shape: f32[2,1], index: 1, kind: input, shape index: {}]   ;;  %s146_s2 = inlined_call_operand.hbm [shape: f32[2,1024], index: 2, kind: output, shape index: {}]  }
   0x1   :  { %8 = vsyncpa [#allocation4], 0  ;;  %s14_s11 = sshll.u32 %s144_s0, 4  ;;  %s116_s12 = smov [#allocation2]   ;;  %s15_s11 = int_to_ptr.hbm [resolvable:$true] %s14_s11 }
   0x2   :  { %s16_s13 = sshll.u32 %s116_s12, 4  ;;  %s17_s13 = int_to_ptr.vmem [resolvable:$true] %s16_s13 }
   0x3   :  { %19 = dma.hbm_to_vmem [thread:$0]  %s15_s11, 256, %s17_s13, [#allocation3]  }
   0x4   :  { %112 = dma.done.wait [#allocation3], 256  }
   0x5   :  { %113 = vsyncadd [#allocation3], 4294967040  ;;  %v117_v0 = vmov 0   ;;  %v28_v1 = vld [vmem:[%s145_s1] sm:$0x3]  ;;  %v27_v7 = vld [vmem:[#allocation2 + $0x8] sm:$0xff] }
   0x6   :  { %63 = vset.pattern.permute.xlu0 %v117_v0  ;;  %v118_v2 = vmov 269488144   ;;  %v26_v6 = vld [vmem:[#allocation2] sm:$0xff]  ;;  %s119_s0 = smov [#allocation5]   ;;  %s49_s19 = sshll.u32 %s146_s2, 4  ;;  %s50_s19 = int_to_ptr.hbm [resolvable:$true] %s49_s19 }
   0x7   :  { %31 = vperm.xlu0 %63, %v28_v1   ;;  %v34_v3 = vunpack.c.l.s4 %v118_v2  ;;  %s47_s16 = sshll.u32 %s119_s0, 4  ;;  %s48_s16 = int_to_ptr.vmem [resolvable:$true] %s47_s16 }
   0x9   :  { %v35_v4 = vunpack.c.0.s8 %v34_v3 }
  0x79   :  { %v32_v5 = vpop.permute.xlu0 %31 }
  0x7a   :  { %v36_v8 = vperm.slane %v32_v5, %v35_v4 }
  0x7c   :  { %v38_v9 = vmul.f32 %v36_v8, %v26_v6  ;;  %v39_v10 = vmul.f32 %v36_v8, %v27_v7 }
  0x7e   :  { %40 = vst [vmem:[#allocation5] sm:$0xff] %v38_v9 }
  0x7f   :  { %41 = vst [vmem:[#allocation5 + $0x8] sm:$0xff] %v39_v10 }
  0x80   :  { %52 = dma.vmem_to_hbm [thread:$0]  %s48_s16, 256, %s50_s19, [#allocation4]  }
  0x81   :  { %114 = dma.done.wait [#allocation4], 256  }
  0x82   :  { %115 = vsyncadd [#allocation4], 4294967040 }
  0x83   :  { %57 = vsyncpa [#allocation3], 1 }
  0x84   :  { %58 = vsyncpa [#allocation4], 1 }

</bundles_post_ra>
